<compile_context>
chip_gen: v7x
topology: tpu7x:2x2x1
jax: 0.10.0
libtpu: 0.0.40
codegen_flags: <defaults>
</compile_context>

<pallas_src>
import math

import jax
import jax.numpy as jnp
from jax.experimental import pallas as pl
from jax.experimental.pallas import tpu as pltpu

SPIKE_T = 4      # ParamHeaveside.T
LANES = 128      # TPU lane width


def _round_up(x, m):
    return ((x + m - 1) // m) * m


def _cdiv(a, b):
    return -(-a // b)


# -----------------------------------------------------------------------------
# Kernel 1: fused LIF recurrence + heaviside + alpha scaling (native-dtype I/O).
#   alpha_ref : (SPIKE_T,) f32 in SMEM (resident across the grid)
#   x_ref     : (SPIKE_T, tm, 128) block in VMEM (native dtype)
#   y_ref     : (SPIKE_T, tm, 128) block in VMEM (native dtype)
# -----------------------------------------------------------------------------
def _heaviside_apply_kernel(alpha_ref, x_ref, y_ref):
    mem = x_ref[0].astype(jnp.float32)
    y_ref[0] = jnp.where(mem > 0.0, alpha_ref[0], 0.0).astype(y_ref.dtype)
    for i in range(1, SPIKE_T):
        xi = x_ref[i].astype(jnp.float32)
        # mem_i = 0.25*mem_{i-1}*(1 - spike_{i-1}) + x_i, as a single select.
        mem = jnp.where(mem > 0.0, xi, 0.25 * mem + xi)
        y_ref[i] = jnp.where(mem > 0.0, alpha_ref[i], 0.0).astype(y_ref.dtype)


# -----------------------------------------------------------------------------
# Kernel 2 (AlphaInit first-forward only): per-step sum(|mem_i|), accumulated
# into a resident (SPIKE_T, 8, 128) VMEM slab with VALU adds only.  The final
# 8x128 -> scalar reduction happens in plain JAX.  Invalid rows of a partial
# last tile are masked out (rows / tm are static, captured in the closure).
# -----------------------------------------------------------------------------
def _make_stats_kernel(tm, rows):
    need_mask = (rows % tm) != 0

    def kernel(x_ref, sum_ref):
        @pl.when(pl.program_id(0) == 0)
        def _init():
            sum_ref[...] = jnp.zeros_like(sum_ref)

        if need_mask:
            row_ids = (jax.lax.broadcasted_iota(jnp.int32, (tm, 1), 0)
                       + pl.program_id(0) * tm)
            valid = row_ids < rows

        mem = x_ref[0].astype(jnp.float32)
        for i in range(SPIKE_T):
            if i > 0:
                xi = x_ref[i].astype(jnp.float32)
                mem = jnp.where(mem > 0.0, xi, 0.25 * mem + xi)
            a = jnp.abs(mem)
            if need_mask:
                a = jnp.where(valid, a, 0.0)
            if tm % 8 == 0:
                # VALU-only accumulation into a vreg-shaped (8, 128) slab.
                sum_ref[i] = sum_ref[i] + jnp.sum(
                    a.reshape(tm // 8, 8, LANES), axis=0)
            else:
                # Tiny single-tile fallback (tm < 8 rows): XLU reduce + select.
                psum = jnp.sum(a, axis=0, keepdims=True)            # (1, 128)
                first = jax.lax.broadcasted_iota(jnp.int32, (8, 1), 0) == 0
                sum_ref[i] = sum_ref[i] + jnp.where(first, psum, 0.0)

    return kernel


# -----------------------------------------------------------------------------
# Wrapper
# -----------------------------------------------------------------------------
def param_heaviside(x, alphas=None, *, alphas_initialized=False, block_rows=2048):
    """ParamHeaveside forward.

    x: (SPIKE_T, ...) array (any float dtype).  Returns (y, alphas).
    If alphas_initialized is False (the module's first forward / AlphaInit
    path), alpha_i = 4 * mean(|mem_i|) is computed and returned; otherwise the
    given per-step alphas (shape (SPIKE_T,)) are used unchanged.
    """
    assert x.shape[0] == SPIKE_T
    if alphas_initialized:
        assert alphas is not None
    orig_shape = x.shape
    dtype = x.dtype
    itemsize = jnp.dtype(dtype).itemsize
    sub = 8 * max(1, 4 // itemsize)      # sublane tile: f32->8, bf16->16, i8->32
    total = int(math.prod(orig_shape[1:]))

    # Lane-dense layout in the NATIVE dtype (no fp32 copy, no row padding).
    xr = x.reshape(SPIKE_T, total)
    lane_pad = (-total) % LANES
    if lane_pad:
        # Only the <=127-element lane remainder is padded; zeros are benign for
        # both the recurrence (mem=0 -> spike=0) and the |mem| statistics.
        xr = jnp.pad(xr, ((0, 0), (0, lane_pad)))
    rows = (total + lane_pad) // LANES
    xr = xr.reshape(SPIKE_T, rows, LANES)

    # Row tiling: multi-MiB blocks amortize the ~0.35us/grid-step overhead;
    # cap the tile so there are >=2 "parallel" tiles when possible (v7x
    # megacore).  A single full-extent tile is used for tiny inputs.
    tm = min(_round_up(block_rows, sub), _round_up(rows, sub))
    if rows >= 2 * sub:
        tm = min(tm, _round_up(_cdiv(rows, 2), sub))
    if tm >= rows:
        tm = rows
    num_tiles = _cdiv(rows, tm)

    block_bytes = SPIKE_T * tm * LANES * itemsize
    vmem_limit = int(min(48 * 2 ** 20, max(16 * 2 ** 20, 6 * block_bytes)))

    if not alphas_initialized:
        # Pass 1 (first forward only): read-only per-step sum(|mem_i|).
        stats = pl.pallas_call(
            _make_stats_kernel(tm, rows),
            out_shape=jax.ShapeDtypeStruct((SPIKE_T, 8, LANES), jnp.float32),
            grid=(num_tiles,),
            in_specs=[pl.BlockSpec((SPIKE_T, tm, LANES), lambda i: (0, i, 0))],
            out_specs=pl.BlockSpec((SPIKE_T, 8, LANES), lambda i: (0, 0, 0)),
            compiler_params=pltpu.CompilerParams(
                dimension_semantics=("arbitrary",),
                vmem_limit_bytes=vmem_limit),
        )(xr)
        alphas = 4.0 * jnp.sum(stats, axis=(1, 2)) / float(total)
    alphas = jnp.asarray(alphas, jnp.float32).reshape(SPIKE_T)

    # Pass 2 (the only pass once alphas are trained/initialized): LIF recurrence
    # + heaviside fused with alpha scaling; alphas live in SMEM.
    yr = pl.pallas_call(
        _heaviside_apply_kernel,
        out_shape=jax.ShapeDtypeStruct((SPIKE_T, rows, LANES), dtype),
        grid=(num_tiles,),
        in_specs=[
            pl.BlockSpec(memory_space=pltpu.MemorySpace.SMEM),        # alphas
            pl.BlockSpec((SPIKE_T, tm, LANES), lambda i: (0, i, 0)),  # x
        ],
        out_specs=pl.BlockSpec((SPIKE_T, tm, LANES), lambda i: (0, i, 0)),
        compiler_params=pltpu.CompilerParams(
            dimension_semantics=("parallel",),
            vmem_limit_bytes=vmem_limit),
    )(alphas, xr)

    y = yr.reshape(SPIKE_T, rows * LANES)
    if lane_pad:
        y = y[:, :total]
    return y.reshape(orig_shape), alphas


# ------------------------------ pure-JAX reference ---------------------------
def param_heaviside_ref(x, alphas=None, alphas_initialized=False):
    xf = x.astype(jnp.float32)
    outs, used = [], []
    mem = None
    for i in range(SPIKE_T):
        if i == 0:
            mem = xf[i]
        else:
            mem = jnp.where(mem > 0.0, xf[i], 0.25 * mem + xf[i])
        spike = (mem > 0.0).astype(jnp.float32)
        a = alphas[i] if alphas_initialized else 4.0 * jnp.mean(jnp.abs(mem))
        outs.append(a * spike)
        used.append(a)
    return jnp.stack(outs).astype(x.dtype), jnp.stack(used).astype(jnp.float32)


def _check_close(y, y_ref, name):
    yf = jnp.asarray(y, jnp.float32)
    rf = jnp.asarray(y_ref, jnp.float32)
    # Tolerate (extremely rare) spike flips exactly at the mem==0 threshold;
    # any real bug produces a large mismatch fraction.
    mismatch = float(jnp.mean((jnp.abs(yf - rf) > 1e-3).astype(jnp.float32)))
    assert mismatch < 1e-3, (name, mismatch)


# ----------------------------------- main -------------------------------------
if __name__ == "__main__":
    key = jax.random.PRNGKey(0)
    k1, k2, k3, k4, k5 = jax.random.split(key, 5)

    # Shapes consistent with the spiking-transformer use of the module:
    # (spike_steps=4, batch, seq, n_embd=64).
    x_small = jax.random.normal(k1, (SPIKE_T, 2, 8, 64), jnp.float32)
    x_large = jax.random.normal(k2, (SPIKE_T, 4, 128, 64), jnp.float32)
    x_odd = jax.random.normal(k4, (SPIKE_T, 3, 10, 64), jnp.float32)    # 15 rows
    x_tiny = jax.random.normal(k5, (SPIKE_T, 2, 5, 10), jnp.float32)    # lane pad
    trained_alphas = 1.0 + 0.1 * jax.random.normal(k3, (SPIKE_T,), jnp.float32)

    fwd_init = jax.jit(lambda x: param_heaviside(x))                    # AlphaInit
    fwd_trained = jax.jit(
        lambda x, a: param_heaviside(x, a, alphas_initialized=True))    # trained
    fwd_init_tiles = jax.jit(lambda x: param_heaviside(x, block_rows=32))
    fwd_init_partial = jax.jit(lambda x: param_heaviside(x, block_rows=8))

    # 1) first forward (uninitialized alphas), small shape
    y1, a1 = jax.block_until_ready(fwd_init(x_small))
    y1_ref, a1_ref = param_heaviside_ref(x_small)
    assert y1.shape == x_small.shape and y1.dtype == x_small.dtype
    assert bool(jnp.allclose(a1, a1_ref, rtol=1e-4, atol=1e-6))
    _check_close(y1, y1_ref, "init/small")

    # 2) trained alphas, small shape
    y2, _ = jax.block_until_ready(fwd_trained(x_small, trained_alphas))
    y2_ref, _ = param_heaviside_ref(x_small, trained_alphas, alphas_initialized=True)
    _check_close(y2, y2_ref, "trained/small")

    # 3) larger input, AlphaInit path (2 parallel tiles)
    y3, a3 = jax.block_until_ready(fwd_init(x_large))
    y3_ref, a3_ref = param_heaviside_ref(x_large)
    assert bool(jnp.allclose(a3, a3_ref, rtol=1e-4, atol=1e-6))
    _check_close(y3, y3_ref, "init/large")

    # 4) same input with small tiles: exercises multi-tile accumulation
    #    ("arbitrary") and the 8-tile parallel apply grid.
    y4, a4 = jax.block_until_ready(fwd_init_tiles(x_large))
    assert bool(jnp.allclose(a4, a3_ref, rtol=1e-4, atol=1e-6))
    _check_close(y4, y3_ref, "init/large/tiled")

    # 5) bf16 native-dtype I/O (no fp32 copies through HBM), trained path
    x_bf = x_large.astype(jnp.bfloat16)
    y5, _ = jax.block_until_ready(fwd_trained(x_bf, trained_alphas))
    y5_ref, _ = param_heaviside_ref(x_bf, trained_alphas, alphas_initialized=True)
    assert y5.dtype == jnp.bfloat16
    _check_close(y5, y5_ref, "trained/bf16")

    # 6) non-tile-multiple row count with a partial last tile (row masking in
    #    the stats kernel) and a shape needing lane-remainder padding.
    y6, a6 = jax.block_until_ready(fwd_init_partial(x_odd))
    y6_ref, a6_ref = param_heaviside_ref(x_odd)
    assert bool(jnp.allclose(a6, a6_ref, rtol=1e-4, atol=1e-6))
    _check_close(y6, y6_ref, "init/partial-tile")

    y7, a7 = jax.block_until_ready(fwd_init(x_tiny))
    y7_ref, a7_ref = param_heaviside_ref(x_tiny)
    assert bool(jnp.allclose(a7, a7_ref, rtol=1e-4, atol=1e-6))
    _check_close(y7, y7_ref, "init/lane-pad")

    assert bool(jnp.all(jnp.isfinite(y1))) and bool(jnp.all(jnp.isfinite(y3)))
    print("KERNEL_OK")
</pallas_src>

<mosaic_0001>
module attributes {stable_mosaic.version = 11 : i64} {
  func.func @kernel(%arg0: i32, %arg1: memref<4x8x128xf32, #tpu.memory_space<vmem>>, %arg2: memref<4x8x128xf32, #tpu.memory_space<vmem>>) attributes {dimension_semantics = [#tpu.dimension_semantics<arbitrary>], iteration_bounds = array<i64: 1>, scalar_prefetch = 0 : i64, scratch_operands = 0 : i64, tpu.core_type = #tpu.core_type<tc>, window_params = [{transform_indices = @transform_0, window_bounds = array<i64: 4, 8, 128>}, {pipeline_mode = #tpu.pipeline_mode<synchronous>, transform_indices = @transform_1, window_bounds = array<i64: 4, 8, 128>}]} {
    %c0_i32 = arith.constant 0 : i32
    %0 = arith.cmpi eq, %arg0, %c0_i32 : i32
    %1 = arith.extui %0 : i1 to i32
    %c0_i32_0 = arith.constant 0 : i32
    %2 = arith.cmpi ne, %1, %c0_i32_0 : i32
    scf.if %2 {
      %cst_42 = arith.constant 0.000000e+00 : f32
      %65 = vector.broadcast %cst_42 : f32 to vector<4x8x128xf32>
      %c0_43 = arith.constant 0 : index
      %c0_44 = arith.constant 0 : index
      %c0_45 = arith.constant 0 : index
      %66 = vector.load %arg2[%c0_43, %c0_44, %c0_45] : memref<4x8x128xf32, #tpu.memory_space<vmem>>, vector<4x8x128xf32>
      tpu.vector_store %arg2[%c0_43, %c0_44, %c0_45], %65 {strides = array<i32>} : memref<4x8x128xf32, #tpu.memory_space<vmem>>, vector<4x8x128xf32>,
    } else {
    }
    %c0 = arith.constant 0 : index
    %c0_1 = arith.constant 0 : index
    %c0_2 = arith.constant 0 : index
    %3 = vector.load %arg1[%c0, %c0_1, %c0_2] : memref<4x8x128xf32, #tpu.memory_space<vmem>>, vector<1x8x128xf32>
    %4 = vector.shape_cast %3 : vector<1x8x128xf32> to vector<8x128xf32>
    %5 = math.absf %4 : vector<8x128xf32>
    %c0_3 = arith.constant 0 : index
    %c0_4 = arith.constant 0 : index
    %c0_5 = arith.constant 0 : index
    %6 = vector.load %arg2[%c0_3, %c0_4, %c0_5] : memref<4x8x128xf32, #tpu.memory_space<vmem>>, vector<1x8x128xf32>
    %7 = vector.shape_cast %6 : vector<1x8x128xf32> to vector<8x128xf32>
    %8 = vector.shape_cast %5 : vector<8x128xf32> to vector<1x8x128xf32>
    %cst = arith.constant dense<0.000000e+00> : vector<8x128xf32>
    %9 = vector.multi_reduction <add>, %8, %cst [0] : vector<1x8x128xf32> to vector<8x128xf32>
    %10 = arith.addf %7, %9 : vector<8x128xf32>
    %c0_6 = arith.constant 0 : index
    %c0_7 = arith.constant 0 : index
    %c0_8 = arith.constant 0 : index
    %11 = vector.load %arg2[%c0_6, %c0_7, %c0_8] : memref<4x8x128xf32, #tpu.memory_space<vmem>>, vector<1x8x128xf32>
    %12 = vector.shape_cast %11 : vector<1x8x128xf32> to vector<8x128xf32>
    %13 = vector.shape_cast %10 : vector<8x128xf32> to vector<1x8x128xf32>
    tpu.vector_store %arg2[%c0_6, %c0_7, %c0_8], %13 {strides = array<i32>} : memref<4x8x128xf32, #tpu.memory_space<vmem>>, vector<1x8x128xf32>,
    %c1 = arith.constant 1 : index
    %c0_9 = arith.constant 0 : index
    %c0_10 = arith.constant 0 : index
    %14 = vector.load %arg1[%c1, %c0_9, %c0_10] : memref<4x8x128xf32, #tpu.memory_space<vmem>>, vector<1x8x128xf32>
    %15 = vector.shape_cast %14 : vector<1x8x128xf32> to vector<8x128xf32>
    %cst_11 = arith.constant 0.000000e+00 : f32
    %16 = vector.broadcast %cst_11 : f32 to vector<8x128xf32>
    %17 = arith.cmpf ogt, %4, %16 : vector<8x128xf32>
    %cst_12 = arith.constant 2.500000e-01 : f32
    %18 = vector.broadcast %cst_12 : f32 to vector<8x128xf32>
    %19 = arith.mulf %18, %4 : vector<8x128xf32>
    %20 = arith.addf %19, %15 : vector<8x128xf32>
    %21 = arith.select %17, %15, %20 : vector<8x128xi1>, vector<8x128xf32>
    %22 = math.absf %21 : vector<8x128xf32>
    %c1_13 = arith.constant 1 : index
    %c0_14 = arith.constant 0 : index
    %c0_15 = arith.constant 0 : index
    %23 = vector.load %arg2[%c1_13, %c0_14, %c0_15] : memref<4x8x128xf32, #tpu.memory_space<vmem>>, vector<1x8x128xf32>
    %24 = vector.shape_cast %23 : vector<1x8x128xf32> to vector<8x128xf32>
    %25 = vector.shape_cast %22 : vector<8x128xf32> to vector<1x8x128xf32>
    %cst_16 = arith.constant dense<0.000000e+00> : vector<8x128xf32>
    %26 = vector.multi_reduction <add>, %25, %cst_16 [0] : vector<1x8x128xf32> to vector<8x128xf32>
    %27 = arith.addf %24, %26 : vector<8x128xf32>
    %c1_17 = arith.constant 1 : index
    %c0_18 = arith.constant 0 : index
    %c0_19 = arith.constant 0 : index
    %28 = vector.load %arg2[%c1_17, %c0_18, %c0_19] : memref<4x8x128xf32, #tpu.memory_space<vmem>>, vector<1x8x128xf32>
    %29 = vector.shape_cast %28 : vector<1x8x128xf32> to vector<8x128xf32>
    %30 = vector.shape_cast %27 : vector<8x128xf32> to vector<1x8x128xf32>
    tpu.vector_store %arg2[%c1_17, %c0_18, %c0_19], %30 {strides = array<i32>} : memref<4x8x128xf32, #tpu.memory_space<vmem>>, vector<1x8x128xf32>,
    %c2 = arith.constant 2 : index
    %c0_20 = arith.constant 0 : index
    %c0_21 = arith.constant 0 : index
    %31 = vector.load %arg1[%c2, %c0_20, %c0_21] : memref<4x8x128xf32, #tpu.memory_space<vmem>>, vector<1x8x128xf32>
    %32 = vector.shape_cast %31 : vector<1x8x128xf32> to vector<8x128xf32>
    %cst_22 = arith.constant 0.000000e+00 : f32
    %33 = vector.broadcast %cst_22 : f32 to vector<8x128xf32>
    %34 = arith.cmpf ogt, %21, %33 : vector<8x128xf32>
    %cst_23 = arith.constant 2.500000e-01 : f32
    %35 = vector.broadcast %cst_23 : f32 to vector<8x128xf32>
    %36 = arith.mulf %35, %21 : vector<8x128xf32>
    %37 = arith.addf %36, %32 : vector<8x128xf32>
    %38 = arith.select %34, %32, %37 : vector<8x128xi1>, vector<8x128xf32>
    %39 = math.absf %38 : vector<8x128xf32>
    %c2_24 = arith.constant 2 : index
    %c0_25 = arith.constant 0 : index
    %c0_26 = arith.constant 0 : index
    %40 = vector.load %arg2[%c2_24, %c0_25, %c0_26] : memref<4x8x128xf32, #tpu.memory_space<vmem>>, vector<1x8x128xf32>
    %41 = vector.shape_cast %40 : vector<1x8x128xf32> to vector<8x128xf32>
    %42 = vector.shape_cast %39 : vector<8x128xf32> to vector<1x8x128xf32>
    %cst_27 = arith.constant dense<0.000000e+00> : vector<8x128xf32>
    %43 = vector.multi_reduction <add>, %42, %cst_27 [0] : vector<1x8x128xf32> to vector<8x128xf32>
    %44 = arith.addf %41, %43 : vector<8x128xf32>
    %c2_28 = arith.constant 2 : index
    %c0_29 = arith.constant 0 : index
    %c0_30 = arith.constant 0 : index
    %45 = vector.load %arg2[%c2_28, %c0_29, %c0_30] : memref<4x8x128xf32, #tpu.memory_space<vmem>>, vector<1x8x128xf32>
    %46 = vector.shape_cast %45 : vector<1x8x128xf32> to vector<8x128xf32>
    %47 = vector.shape_cast %44 : vector<8x128xf32> to vector<1x8x128xf32>
    tpu.vector_store %arg2[%c2_28, %c0_29, %c0_30], %47 {strides = array<i32>} : memref<4x8x128xf32, #tpu.memory_space<vmem>>, vector<1x8x128xf32>,
    %c3 = arith.constant 3 : index
    %c0_31 = arith.constant 0 : index
    %c0_32 = arith.constant 0 : index
    %48 = vector.load %arg1[%c3, %c0_31, %c0_32] : memref<4x8x128xf32, #tpu.memory_space<vmem>>, vector<1x8x128xf32>
    %49 = vector.shape_cast %48 : vector<1x8x128xf32> to vector<8x128xf32>
    %cst_33 = arith.constant 0.000000e+00 : f32
    %50 = vector.broadcast %cst_33 : f32 to vector<8x128xf32>
    %51 = arith.cmpf ogt, %38, %50 : vector<8x128xf32>
    %cst_34 = arith.constant 2.500000e-01 : f32
    %52 = vector.broadcast %cst_34 : f32 to vector<8x128xf32>
    %53 = arith.mulf %52, %38 : vector<8x128xf32>
    %54 = arith.addf %53, %49 : vector<8x128xf32>
    %55 = arith.select %51, %49, %54 : vector<8x128xi1>, vector<8x128xf32>
    %56 = math.absf %55 : vector<8x128xf32>
    %c3_35 = arith.constant 3 : index
    %c0_36 = arith.constant 0 : index
    %c0_37 = arith.constant 0 : index
    %57 = vector.load %arg2[%c3_35, %c0_36, %c0_37] : memref<4x8x128xf32, #tpu.memory_space<vmem>>, vector<1x8x128xf32>
    %58 = vector.shape_cast %57 : vector<1x8x128xf32> to vector<8x128xf32>
    %59 = vector.shape_cast %56 : vector<8x128xf32> to vector<1x8x128xf32>
    %cst_38 = arith.constant dense<0.000000e+00> : vector<8x128xf32>
    %60 = vector.multi_reduction <add>, %59, %cst_38 [0] : vector<1x8x128xf32> to vector<8x128xf32>
    %61 = arith.addf %58, %60 : vector<8x128xf32>
    %c3_39 = arith.constant 3 : index
    %c0_40 = arith.constant 0 : index
    %c0_41 = arith.constant 0 : index
    %62 = vector.load %arg2[%c3_39, %c0_40, %c0_41] : memref<4x8x128xf32, #tpu.memory_space<vmem>>, vector<1x8x128xf32>
    %63 = vector.shape_cast %62 : vector<1x8x128xf32> to vector<8x128xf32>
    %64 = vector.shape_cast %61 : vector<8x128xf32> to vector<1x8x128xf32>
    tpu.vector_store %arg2[%c3_39, %c0_40, %c0_41], %64 {strides = array<i32>} : memref<4x8x128xf32, #tpu.memory_space<vmem>>, vector<1x8x128xf32>,
    return
  }
  func.func @transform_0(%arg0: i32) -> (i32, i32, i32) {
    %c0_i32 = arith.constant 0 : i32
    %c0_i32_0 = arith.constant 0 : i32
    %c0_i32_1 = arith.constant 0 : i32
    return %c0_i32, %arg0, %c0_i32_0 : i32, i32, i32
  }
  func.func @transform_1(%arg0: i32) -> (i32, i32, i32) {
    %c0_i32 = arith.constant 0 : i32
    %c0_i32_0 = arith.constant 0 : i32
    %c0_i32_1 = arith.constant 0 : i32
    %c0_i32_2 = arith.constant 0 : i32
    return %c0_i32, %c0_i32_0, %c0_i32_1 : i32, i32, i32
  }
}

module attributes {stable_mosaic.version = 11 : i64} {
  func.func @_heaviside_apply_kernel(%arg0: i32, %arg1: memref<4xf32, #tpu.memory_space<smem>>, %arg2: memref<4x8x128xf32, #tpu.memory_space<vmem>>, %arg3: memref<4x8x128xf32, #tpu.memory_space<vmem>>) attributes {dimension_semantics = [#tpu.dimension_semantics<parallel>], iteration_bounds = array<i64: 1>, scalar_prefetch = 0 : i64, scratch_operands = 0 : i64, tpu.core_type = #tpu.core_type<tc>, window_params = [{transform_indices = @transform_0, window_bounds = array<i64: 4>}, {transform_indices = @transform_1, window_bounds = array<i64: 4, 8, 128>}, {transform_indices = @transform_2, window_bounds = array<i64: 4, 8, 128>}]} {
    %c0 = arith.constant 0 : index
    %c0_0 = arith.constant 0 : index
    %c0_1 = arith.constant 0 : index
    %0 = vector.load %arg2[%c0, %c0_0, %c0_1] : memref<4x8x128xf32, #tpu.memory_space<vmem>>, vector<1x8x128xf32>
    %1 = vector.shape_cast %0 : vector<1x8x128xf32> to vector<8x128xf32>
    %cst = arith.constant 0.000000e+00 : f32
    %2 = vector.broadcast %cst : f32 to vector<8x128xf32>
    %3 = arith.cmpf ogt, %1, %2 : vector<8x128xf32>
    %c0_2 = arith.constant 0 : index
    %4 = memref.load %arg1[%c0_2] : memref<4xf32, #tpu.memory_space<smem>>
    %cst_3 = arith.constant 0.000000e+00 : f32
    %5 = vector.broadcast %4 : f32 to vector<8x128xf32>
    %6 = vector.broadcast %cst_3 : f32 to vector<8x128xf32>
    %7 = arith.select %3, %5, %6 : vector<8x128xi1>, vector<8x128xf32>
    %c0_4 = arith.constant 0 : index
    %c0_5 = arith.constant 0 : index
    %c0_6 = arith.constant 0 : index
    %8 = vector.load %arg3[%c0_4, %c0_5, %c0_6] : memref<4x8x128xf32, #tpu.memory_space<vmem>>, vector<1x8x128xf32>
    %9 = vector.shape_cast %8 : vector<1x8x128xf32> to vector<8x128xf32>
    %10 = vector.shape_cast %7 : vector<8x128xf32> to vector<1x8x128xf32>
    tpu.vector_store %arg3[%c0_4, %c0_5, %c0_6], %10 {strides = array<i32>} : memref<4x8x128xf32, #tpu.memory_space<vmem>>, vector<1x8x128xf32>,
    %c1 = arith.constant 1 : index
    %c0_7 = arith.constant 0 : index
    %c0_8 = arith.constant 0 : index
    %11 = vector.load %arg2[%c1, %c0_7, %c0_8] : memref<4x8x128xf32, #tpu.memory_space<vmem>>, vector<1x8x128xf32>
    %12 = vector.shape_cast %11 : vector<1x8x128xf32> to vector<8x128xf32>
    %cst_9 = arith.constant 0.000000e+00 : f32
    %13 = vector.broadcast %cst_9 : f32 to vector<8x128xf32>
    %14 = arith.cmpf ogt, %1, %13 : vector<8x128xf32>
    %cst_10 = arith.constant 2.500000e-01 : f32
    %15 = vector.broadcast %cst_10 : f32 to vector<8x128xf32>
    %16 = arith.mulf %15, %1 : vector<8x128xf32>
    %17 = arith.addf %16, %12 : vector<8x128xf32>
    %18 = arith.select %14, %12, %17 : vector<8x128xi1>, vector<8x128xf32>
    %cst_11 = arith.constant 0.000000e+00 : f32
    %19 = vector.broadcast %cst_11 : f32 to vector<8x128xf32>
    %20 = arith.cmpf ogt, %18, %19 : vector<8x128xf32>
    %c1_12 = arith.constant 1 : index
    %21 = memref.load %arg1[%c1_12] : memref<4xf32, #tpu.memory_space<smem>>
    %cst_13 = arith.constant 0.000000e+00 : f32
    %22 = vector.broadcast %21 : f32 to vector<8x128xf32>
    %23 = vector.broadcast %cst_13 : f32 to vector<8x128xf32>
    %24 = arith.select %20, %22, %23 : vector<8x128xi1>, vector<8x128xf32>
    %c1_14 = arith.constant 1 : index
    %c0_15 = arith.constant 0 : index
    %c0_16 = arith.constant 0 : index
    %25 = vector.load %arg3[%c1_14, %c0_15, %c0_16] : memref<4x8x128xf32, #tpu.memory_space<vmem>>, vector<1x8x128xf32>
    %26 = vector.shape_cast %25 : vector<1x8x128xf32> to vector<8x128xf32>
    %27 = vector.shape_cast %24 : vector<8x128xf32> to vector<1x8x128xf32>
    tpu.vector_store %arg3[%c1_14, %c0_15, %c0_16], %27 {strides = array<i32>} : memref<4x8x128xf32, #tpu.memory_space<vmem>>, vector<1x8x128xf32>,
    %c2 = arith.constant 2 : index
    %c0_17 = arith.constant 0 : index
    %c0_18 = arith.constant 0 : index
    %28 = vector.load %arg2[%c2, %c0_17, %c0_18] : memref<4x8x128xf32, #tpu.memory_space<vmem>>, vector<1x8x128xf32>
    %29 = vector.shape_cast %28 : vector<1x8x128xf32> to vector<8x128xf32>
    %cst_19 = arith.constant 0.000000e+00 : f32
    %30 = vector.broadcast %cst_19 : f32 to vector<8x128xf32>
    %31 = arith.cmpf ogt, %18, %30 : vector<8x128xf32>
    %cst_20 = arith.constant 2.500000e-01 : f32
    %32 = vector.broadcast %cst_20 : f32 to vector<8x128xf32>
    %33 = arith.mulf %32, %18 : vector<8x128xf32>
    %34 = arith.addf %33, %29 : vector<8x128xf32>
    %35 = arith.select %31, %29, %34 : vector<8x128xi1>, vector<8x128xf32>
    %cst_21 = arith.constant 0.000000e+00 : f32
    %36 = vector.broadcast %cst_21 : f32 to vector<8x128xf32>
    %37 = arith.cmpf ogt, %35, %36 : vector<8x128xf32>
    %c2_22 = arith.constant 2 : index
    %38 = memref.load %arg1[%c2_22] : memref<4xf32, #tpu.memory_space<smem>>
    %cst_23 = arith.constant 0.000000e+00 : f32
    %39 = vector.broadcast %38 : f32 to vector<8x128xf32>
    %40 = vector.broadcast %cst_23 : f32 to vector<8x128xf32>
    %41 = arith.select %37, %39, %40 : vector<8x128xi1>, vector<8x128xf32>
    %c2_24 = arith.constant 2 : index
    %c0_25 = arith.constant 0 : index
    %c0_26 = arith.constant 0 : index
    %42 = vector.load %arg3[%c2_24, %c0_25, %c0_26] : memref<4x8x128xf32, #tpu.memory_space<vmem>>, vector<1x8x128xf32>
    %43 = vector.shape_cast %42 : vector<1x8x128xf32> to vector<8x128xf32>
    %44 = vector.shape_cast %41 : vector<8x128xf32> to vector<1x8x128xf32>
    tpu.vector_store %arg3[%c2_24, %c0_25, %c0_26], %44 {strides = array<i32>} : memref<4x8x128xf32, #tpu.memory_space<vmem>>, vector<1x8x128xf32>,
    %c3 = arith.constant 3 : index
    %c0_27 = arith.constant 0 : index
    %c0_28 = arith.constant 0 : index
    %45 = vector.load %arg2[%c3, %c0_27, %c0_28] : memref<4x8x128xf32, #tpu.memory_space<vmem>>, vector<1x8x128xf32>
    %46 = vector.shape_cast %45 : vector<1x8x128xf32> to vector<8x128xf32>
    %cst_29 = arith.constant 0.000000e+00 : f32
    %47 = vector.broadcast %cst_29 : f32 to vector<8x128xf32>
    %48 = arith.cmpf ogt, %35, %47 : vector<8x128xf32>
    %cst_30 = arith.constant 2.500000e-01 : f32
    %49 = vector.broadcast %cst_30 : f32 to vector<8x128xf32>
    %50 = arith.mulf %49, %35 : vector<8x128xf32>
    %51 = arith.addf %50, %46 : vector<8x128xf32>
    %52 = arith.select %48, %46, %51 : vector<8x128xi1>, vector<8x128xf32>
    %cst_31 = arith.constant 0.000000e+00 : f32
    %53 = vector.broadcast %cst_31 : f32 to vector<8x128xf32>
    %54 = arith.cmpf ogt, %52, %53 : vector<8x128xf32>
    %c3_32 = arith.constant 3 : index
    %55 = memref.load %arg1[%c3_32] : memref<4xf32, #tpu.memory_space<smem>>
    %cst_33 = arith.constant 0.000000e+00 : f32
    %56 = vector.broadcast %55 : f32 to vector<8x128xf32>
    %57 = vector.broadcast %cst_33 : f32 to vector<8x128xf32>
    %58 = arith.select %54, %56, %57 : vector<8x128xi1>, vector<8x128xf32>
    %c3_34 = arith.constant 3 : index
    %c0_35 = arith.constant 0 : index
    %c0_36 = arith.constant 0 : index
    %59 = vector.load %arg3[%c3_34, %c0_35, %c0_36] : memref<4x8x128xf32, #tpu.memory_space<vmem>>, vector<1x8x128xf32>
    %60 = vector.shape_cast %59 : vector<1x8x128xf32> to vector<8x128xf32>
    %61 = vector.shape_cast %58 : vector<8x128xf32> to vector<1x8x128xf32>
    tpu.vector_store %arg3[%c3_34, %c0_35, %c0_36], %61 {strides = array<i32>} : memref<4x8x128xf32, #tpu.memory_space<vmem>>, vector<1x8x128xf32>,
    return
  }
  func.func @transform_0(%arg0: i32) -> i32 {
    %c0_i32 = arith.constant 0 : i32
    %c0_i32_0 = arith.constant 0 : i32
    return %c0_i32 : i32
  }
  func.func @transform_1(%arg0: i32) -> (i32, i32, i32) {
    %c0_i32 = arith.constant 0 : i32
    %c0_i32_0 = arith.constant 0 : i32
    %c0_i32_1 = arith.constant 0 : i32
    return %c0_i32, %arg0, %c0_i32_0 : i32, i32, i32
  }
  func.func @transform_2(%arg0: i32) -> (i32, i32, i32) {
    %c0_i32 = arith.constant 0 : i32
    %c0_i32_0 = arith.constant 0 : i32
    %c0_i32_1 = arith.constant 0 : i32
    return %c0_i32, %arg0, %c0_i32_0 : i32, i32, i32
  }
}

</mosaic_0001>

<bundles_post_ra>
// kernel: _lambda_.2
= control target key start
LH: loop header
LB: loop body
LE: loop exit
PB: predicated region body
PF: predicated region fallthrough
CT: control target
= control target key end

     0   :  { %s106_s0 = inlined_call_operand.vmem [shape: f32[4,8,128], index: 0, kind: input, shape index: {}]   ;;  %s107_s1 = inlined_call_operand.vmem [shape: f32[4,8,128], index: 1, kind: output, shape index: {}]  }
   0x1   :  { %v16_v0 = vld [vmem:[%s106_s0] sm:$0xff]  ;;  %v62_v1 = vld [vmem:[%s106_s0 + $0x8] sm:$0xff]  ;;  %v65_v6 = vld [vmem:[%s106_s0 + $0x10] sm:$0xff] }
   0x2   :  { %v17_v2 = vand.u32 2147483647, %v16_v0  ;;  %v25_v3 = vmul.f32 0.25, %v16_v0  ;;  %vm24_vm0 = vcmp.gt.f32.partialorder %v16_v0, 0.0  ;;  %v68_v11 = vld [vmem:[%s106_s0 + $0x18] sm:$0xff] }
   0x4   :  { %v26_v4 = vadd.f32 %v62_v1, %v25_v3  ;;  %21 = vst [vmem:[%s107_s1] sm:$0xff] %v17_v2 }
   0x6   :  { %v27_v5 = vsel %vm24_vm0, %v62_v1, %v26_v4 }
   0x7   :  { %v28_v7 = vand.u32 2147483647, %v27_v5  ;;  %v37_v8 = vmul.f32 0.25, %v27_v5  ;;  %vm36_vm1 = vcmp.gt.f32.partialorder %v27_v5, 0.0 }
   0x9   :  { %v38_v9 = vadd.f32 %v65_v6, %v37_v8  ;;  %64 = vst [vmem:[%s107_s1 + $0x8] sm:$0xff] %v28_v7 }
   0xb   :  { %v39_v10 = vsel %vm36_vm1, %v65_v6, %v38_v9 }
   0xc   :  { %v40_v12 = vand.u32 2147483647, %v39_v10  ;;  %v49_v13 = vmul.f32 0.25, %v39_v10  ;;  %vm48_vm2 = vcmp.gt.f32.partialorder %v39_v10, 0.0 }
   0xe   :  { %v50_v14 = vadd.f32 %v68_v11, %v49_v13  ;;  %67 = vst [vmem:[%s107_s1 + $0x10] sm:$0xff] %v40_v12 }
  0x10   :  { %v51_v15 = vsel %vm48_vm2, %v68_v11, %v50_v14 }
  0x11   :  { %v52_v16 = vand.u32 2147483647, %v51_v15 }
  0x13   :  { %70 = vst [vmem:[%s107_s1 + $0x18] sm:$0xff] %v52_v16 }

// kernel: _lambda_.3
= control target key start
LH: loop header
LB: loop body
LE: loop exit
PB: predicated region body
PF: predicated region fallthrough
CT: control target
= control target key end

     0   :  { %7 = vsyncpa [#allocation3], 0  ;;  %s135_s0 = inlined_call_operand.vmem [shape: f32[4], index: 0, kind: input, shape index: {}]   ;;  %s136_s1 = inlined_call_operand.vmem [shape: f32[4,8,128], index: 1, kind: input, shape index: {}]   ;;  %s137_s2 = inlined_call_operand.vmem [shape: f32[4,8,128], index: 2, kind: output, shape index: {}]  }
   0x1   :  { %s14_s11 = sshll.u32 %s135_s0, 4  ;;  %s15_s11 = int_to_ptr.vmem [resolvable:$true] %s14_s11 }
   0x2   :  { %s78_s12 = scalar_lea.vmem %s15_s11, 16  ;;  %p83_p1 = scmp.lt.s32.totalorder %s15_s11, %s15_s11 }
   0x3   :  { %p79_p0 = scmp.ne.s32.totalorder %s15_s11, %s78_s12  ;;  %p84_p2 = scmp.lt.s32.totalorder %s78_s12, %s78_s12 }
   0x5   :  { %p85_p3 = por %p84_p2, %p83_p1 }
   0x7   :  { %p86_p4 = pnand %p85_p3, %p79_p0 }
   0x9   :  { %89 = shalt.err (!%p86_p4)
}
   0xa   :  { %s92_s13 = smov [#allocation2]  }
   0xb   :  { %17 = dma.vmem_to_smem %s15_s11, 16, %s92_s13, [#allocation3]  }
   0xc   :  { %90 = dma.done.wait [#allocation3], 16  }
   0xd   :  { %91 = vsyncadd [#allocation3], 4294967280 }
   0xe   :  { %23 = sfence }
   0xf   :  { %v24_v0 = vld [vmem:[%s136_s1] sm:$0xff]  ;;  %s26_s16 = sld [smem:[#allocation2]]  ;;  %v68_v1 = vld [vmem:[%s136_s1 + $0x8] sm:$0xff]  ;;  %s69_s18 = sld [smem:[#allocation2 + $0x1]]  ;;  %v71_v5 = vld [vmem:[%s136_s1 + $0x10] sm:$0xff] }
  0x10   :  { %v32_v2 = vmul.f32 0.25, %v24_v0  ;;  %s72_s19 = sld [smem:[#allocation2 + $0x2]]  ;;  %vm25_vm0 = vcmp.gt.f32.partialorder %v24_v0, 0.0  ;;  %s75_s22 = sld [smem:[#allocation2 + $0x3]]  ;;  %v74_v14 = vld [vmem:[%s136_s1 + $0x18] sm:$0xff] }
  0x12   :  { %v33_v3 = vadd.f32 %v68_v1, %v32_v2 }
  0x14   :  { %v34_v4 = vsel %vm25_vm0, %v68_v1, %v33_v3 }
  0x15   :  { %v27_v6 = vstv %s26_s16  ;;  %vm35_vm1 = vcmp.gt.f32.partialorder %v34_v4, 0.0  ;;  %v37_v7 = vstv %s69_s18  ;;  %v43_v8 = vmul.f32 0.25, %v34_v4 }
  0x16   :  { %v28_v9 = vsel %vm25_vm0, %v27_v6, 0.0  ;;  %v38_v10 = vsel %vm35_vm1, %v37_v7, 0.0  ;;  %v48_v12 = vstv %s72_s19  ;;  %v59_v18 = vstv %s75_s22 }
  0x17   :  { %29 = vst [vmem:[%s137_s2] sm:$0xff] %v28_v9  ;;  %70 = vst [vmem:[%s137_s2 + $0x8] sm:$0xff] %v38_v10  ;;  %v44_v11 = vadd.f32 %v71_v5, %v43_v8 }
  0x19   :  { %v45_v13 = vsel %vm35_vm1, %v71_v5, %v44_v11 }
  0x1a   :  { %vm46_vm2 = vcmp.gt.f32.partialorder %v45_v13, 0.0  ;;  %v54_v15 = vmul.f32 0.25, %v45_v13 }
  0x1b   :  { %v49_v16 = vsel %vm46_vm2, %v48_v12, 0.0 }
  0x1c   :  { %73 = vst [vmem:[%s137_s2 + $0x10] sm:$0xff] %v49_v16  ;;  %v55_v17 = vadd.f32 %v74_v14, %v54_v15 }
  0x1e   :  { %v56_v19 = vsel %vm46_vm2, %v74_v14, %v55_v17 }
  0x1f   :  { %vm57_vm3 = vcmp.gt.f32.partialorder %v56_v19, 0.0 }
  0x20   :  { %v60_v20 = vsel %vm57_vm3, %v59_v18, 0.0 }
  0x21   :  { %76 = vst [vmem:[%s137_s2 + $0x18] sm:$0xff] %v60_v20 }
  0x22   :  { %67 = vsyncpa [#allocation3], 1 }

</bundles_post_ra>
